<compile_context>
chip_gen: v7x
topology: tpu7x:2x2x1
jax: 0.10.0
libtpu: 0.0.40
codegen_flags: <defaults>
</compile_context>

<pallas_src>
import jax
import jax.numpy as jnp
from jax.experimental import pallas as pl
from jax.experimental.pallas import tpu as pltpu

DEGREE = 3
NUM_FEATS = DEGREE ** 2 + 2 * DEGREE  # 15
TILE_N = 128                          # lane tile: points per grid step


def bivariate_poly_kernel(x_ref, w_ref, o_ref):
    # x_ref: (2, TILE_N) VMEM  (row 0 = x0 lane-vector, row 1 = y0 lane-vector)
    # w_ref: (NUM_FEATS,) SMEM (flat fc1 weight)
    # o_ref: (1, TILE_N) VMEM  (lane-dense output)
    xv = x_ref[...]                     # (2, TILE_N), single full-tile load
    x0 = xv[0:1, :]                     # (1, TILE_N)
    y0 = xv[1:2, :]                     # (1, TILE_N)

    # Powers x^1..x^D, y^1..y^D (DEGREE is a compile-time constant -> unrolled
    # elementwise VPU muls over the full lane tile).
    x_pows = [x0]
    y_pows = [y0]
    for _ in range(DEGREE - 1):
        x_pows.append(x_pows[-1] * x0)
        y_pows.append(y_pows[-1] * y0)

    # Accumulator 0: pure x-power and y-power terms (broadcast MACs from SMEM).
    acc0 = w_ref[0] * x_pows[0]
    for i in range(1, DEGREE):
        acc0 = acc0 + w_ref[i] * x_pows[i]
    for j in range(DEGREE):
        acc0 = acc0 + w_ref[DEGREE + j] * y_pows[j]

    # Accumulator 1: the 9 combo terms, factored as
    #   sum_i x^(i+1) * ( sum_j w[2D + i*D + j] * y^(j+1) )
    acc1 = None
    for i in range(DEGREE):
        base = 2 * DEGREE + i * DEGREE
        inner = w_ref[base] * y_pows[0]
        for j in range(1, DEGREE):
            inner = inner + w_ref[base + j] * y_pows[j]
        term = x_pows[i] * inner
        acc1 = term if acc1 is None else acc1 + term

    o_ref[...] = acc0 + acc1


def bivariate_poly(x, w):
    """Batched bivariate_poly forward.

    x: (N, 2) float32 points (N=1 reproduces the torch module exactly).
    w: (1, NUM_FEATS) or (NUM_FEATS,) float32 fc1 weight (nn.Linear layout).
    Returns: (N,) float32.
    """
    x = jnp.asarray(x, jnp.float32)
    w_flat = jnp.asarray(w, jnp.float32).reshape(NUM_FEATS)

    n = x.shape[0]
    n_pad = pl.cdiv(n, TILE_N) * TILE_N

    # Lane-dense layout: points along the 128-lane axis, zero-padded.
    x_t = jnp.zeros((2, n_pad), jnp.float32).at[:, :n].set(x.T)

    out = pl.pallas_call(
        bivariate_poly_kernel,
        out_shape=jax.ShapeDtypeStruct((1, n_pad), jnp.float32),
        grid=(n_pad // TILE_N,),
        in_specs=[
            pl.BlockSpec((2, TILE_N), lambda i: (0, i)),       # x tile in VMEM
            pl.BlockSpec(memory_space=pltpu.SMEM),             # flat weights
        ],
        out_specs=pl.BlockSpec((1, TILE_N), lambda i: (0, i)),  # lane-dense out
        compiler_params=pltpu.CompilerParams(
            dimension_semantics=("parallel",)),                 # megacore-friendly
    )(x_t, w_flat)

    return out[0, :n]


def bivariate_poly_ref(x, w):
    """Pure-JAX reference mirroring the PyTorch forward (batched per point)."""
    x = jnp.asarray(x, jnp.float32)
    x0 = x[:, 0:1]
    y0 = x[:, 1:2]
    exps = jnp.arange(1, DEGREE + 1, dtype=jnp.float32)
    xp = x0 ** exps                                    # (N, D)
    yp = y0 ** exps                                    # (N, D)
    combos = (xp[:, :, None] * yp[:, None, :]).reshape(x.shape[0], DEGREE * DEGREE)
    feat = jnp.concatenate([xp, yp, combos], axis=1)   # (N, 15)
    return feat @ jnp.reshape(w, (NUM_FEATS,))         # (N,)


if __name__ == "__main__":
    key = jax.random.PRNGKey(0)
    kx, kb, kw = jax.random.split(key, 3)

    # fc1 weight, shape (1, 15) like nn.Linear(15, 1, bias=False).weight
    bound = 1.0 / (NUM_FEATS ** 0.5)
    w = jax.random.uniform(
        kw, (1, NUM_FEATS), minval=-bound, maxval=bound, dtype=jnp.float32
    )

    # 1) exact module semantics: a single 2-D point -> output shape (1,)
    x1 = jax.random.normal(kx, (1, 2), dtype=jnp.float32)
    out1 = bivariate_poly(x1, w)
    jax.block_until_ready(out1)
    ref1 = bivariate_poly_ref(x1, w)
    assert out1.shape == (1,)
    assert jnp.allclose(out1, ref1, rtol=1e-5, atol=1e-5), (out1, ref1)

    # 2) batched, lane-vectorized path (amortizes the launch overhead)
    xb = jax.random.normal(kb, (256, 2), dtype=jnp.float32)
    outb = bivariate_poly(xb, w)
    jax.block_until_ready(outb)
    refb = bivariate_poly_ref(xb, w)
    assert outb.shape == (256,)
    assert jnp.allclose(outb, refb, rtol=1e-5, atol=1e-5)

    print("KERNEL_OK")
</pallas_src>

<mosaic_0001>
module attributes {stable_mosaic.version = 11 : i64} {
  func.func @bivariate_poly_kernel(%arg0: i32, %arg1: memref<2x128xf32, #tpu.memory_space<vmem>>, %arg2: memref<15xf32, #tpu.memory_space<smem>>, %arg3: memref<1x128xf32, #tpu.memory_space<vmem>>) attributes {dimension_semantics = [#tpu.dimension_semantics<parallel>], iteration_bounds = array<i64: 1>, scalar_prefetch = 0 : i64, scratch_operands = 0 : i64, tpu.core_type = #tpu.core_type<tc>, window_params = [{transform_indices = @transform_0, window_bounds = array<i64: 2, 128>}, {transform_indices = @transform_1, window_bounds = array<i64: 15>}, {transform_indices = @transform_2, window_bounds = array<i64: 1, 128>}]} {
    %c0 = arith.constant 0 : index
    %c0_0 = arith.constant 0 : index
    %0 = vector.load %arg1[%c0, %c0_0] : memref<2x128xf32, #tpu.memory_space<vmem>>, vector<2x128xf32>
    %1 = vector.extract_strided_slice %0 {offsets = [0, 0], sizes = [1, 128], strides = [1, 1]} : vector<2x128xf32> to vector<1x128xf32>
    %2 = vector.extract_strided_slice %0 {offsets = [1, 0], sizes = [1, 128], strides = [1, 1]} : vector<2x128xf32> to vector<1x128xf32>
    %3 = arith.mulf %1, %1 : vector<1x128xf32>
    %4 = arith.mulf %2, %2 : vector<1x128xf32>
    %5 = arith.mulf %3, %1 : vector<1x128xf32>
    %6 = arith.mulf %4, %2 : vector<1x128xf32>
    %c0_1 = arith.constant 0 : index
    %7 = memref.load %arg2[%c0_1] : memref<15xf32, #tpu.memory_space<smem>>
    %8 = vector.broadcast %7 : f32 to vector<1x128xf32>
    %9 = arith.mulf %8, %1 : vector<1x128xf32>
    %c1 = arith.constant 1 : index
    %10 = memref.load %arg2[%c1] : memref<15xf32, #tpu.memory_space<smem>>
    %11 = vector.broadcast %10 : f32 to vector<1x128xf32>
    %12 = arith.mulf %11, %3 : vector<1x128xf32>
    %13 = arith.addf %9, %12 : vector<1x128xf32>
    %c2 = arith.constant 2 : index
    %14 = memref.load %arg2[%c2] : memref<15xf32, #tpu.memory_space<smem>>
    %15 = vector.broadcast %14 : f32 to vector<1x128xf32>
    %16 = arith.mulf %15, %5 : vector<1x128xf32>
    %17 = arith.addf %13, %16 : vector<1x128xf32>
    %c3 = arith.constant 3 : index
    %18 = memref.load %arg2[%c3] : memref<15xf32, #tpu.memory_space<smem>>
    %19 = vector.broadcast %18 : f32 to vector<1x128xf32>
    %20 = arith.mulf %19, %2 : vector<1x128xf32>
    %21 = arith.addf %17, %20 : vector<1x128xf32>
    %c4 = arith.constant 4 : index
    %22 = memref.load %arg2[%c4] : memref<15xf32, #tpu.memory_space<smem>>
    %23 = vector.broadcast %22 : f32 to vector<1x128xf32>
    %24 = arith.mulf %23, %4 : vector<1x128xf32>
    %25 = arith.addf %21, %24 : vector<1x128xf32>
    %c5 = arith.constant 5 : index
    %26 = memref.load %arg2[%c5] : memref<15xf32, #tpu.memory_space<smem>>
    %27 = vector.broadcast %26 : f32 to vector<1x128xf32>
    %28 = arith.mulf %27, %6 : vector<1x128xf32>
    %29 = arith.addf %25, %28 : vector<1x128xf32>
    %c6 = arith.constant 6 : index
    %30 = memref.load %arg2[%c6] : memref<15xf32, #tpu.memory_space<smem>>
    %31 = vector.broadcast %30 : f32 to vector<1x128xf32>
    %32 = arith.mulf %31, %2 : vector<1x128xf32>
    %c7 = arith.constant 7 : index
    %33 = memref.load %arg2[%c7] : memref<15xf32, #tpu.memory_space<smem>>
    %34 = vector.broadcast %33 : f32 to vector<1x128xf32>
    %35 = arith.mulf %34, %4 : vector<1x128xf32>
    %36 = arith.addf %32, %35 : vector<1x128xf32>
    %c8 = arith.constant 8 : index
    %37 = memref.load %arg2[%c8] : memref<15xf32, #tpu.memory_space<smem>>
    %38 = vector.broadcast %37 : f32 to vector<1x128xf32>
    %39 = arith.mulf %38, %6 : vector<1x128xf32>
    %40 = arith.addf %36, %39 : vector<1x128xf32>
    %41 = arith.mulf %1, %40 : vector<1x128xf32>
    %c9 = arith.constant 9 : index
    %42 = memref.load %arg2[%c9] : memref<15xf32, #tpu.memory_space<smem>>
    %43 = vector.broadcast %42 : f32 to vector<1x128xf32>
    %44 = arith.mulf %43, %2 : vector<1x128xf32>
    %c10 = arith.constant 10 : index
    %45 = memref.load %arg2[%c10] : memref<15xf32, #tpu.memory_space<smem>>
    %46 = vector.broadcast %45 : f32 to vector<1x128xf32>
    %47 = arith.mulf %46, %4 : vector<1x128xf32>
    %48 = arith.addf %44, %47 : vector<1x128xf32>
    %c11 = arith.constant 11 : index
    %49 = memref.load %arg2[%c11] : memref<15xf32, #tpu.memory_space<smem>>
    %50 = vector.broadcast %49 : f32 to vector<1x128xf32>
    %51 = arith.mulf %50, %6 : vector<1x128xf32>
    %52 = arith.addf %48, %51 : vector<1x128xf32>
    %53 = arith.mulf %3, %52 : vector<1x128xf32>
    %54 = arith.addf %41, %53 : vector<1x128xf32>
    %c12 = arith.constant 12 : index
    %55 = memref.load %arg2[%c12] : memref<15xf32, #tpu.memory_space<smem>>
    %56 = vector.broadcast %55 : f32 to vector<1x128xf32>
    %57 = arith.mulf %56, %2 : vector<1x128xf32>
    %c13 = arith.constant 13 : index
    %58 = memref.load %arg2[%c13] : memref<15xf32, #tpu.memory_space<smem>>
    %59 = vector.broadcast %58 : f32 to vector<1x128xf32>
    %60 = arith.mulf %59, %4 : vector<1x128xf32>
    %61 = arith.addf %57, %60 : vector<1x128xf32>
    %c14 = arith.constant 14 : index
    %62 = memref.load %arg2[%c14] : memref<15xf32, #tpu.memory_space<smem>>
    %63 = vector.broadcast %62 : f32 to vector<1x128xf32>
    %64 = arith.mulf %63, %6 : vector<1x128xf32>
    %65 = arith.addf %61, %64 : vector<1x128xf32>
    %66 = arith.mulf %5, %65 : vector<1x128xf32>
    %67 = arith.addf %54, %66 : vector<1x128xf32>
    %68 = arith.addf %29, %67 : vector<1x128xf32>
    %c0_2 = arith.constant 0 : index
    %c0_3 = arith.constant 0 : index
    %69 = vector.load %arg3[%c0_2, %c0_3] : memref<1x128xf32, #tpu.memory_space<vmem>>, vector<1x128xf32>
    tpu.vector_store %arg3[%c0_2, %c0_3], %68 {strides = array<i32>} : memref<1x128xf32, #tpu.memory_space<vmem>>, vector<1x128xf32>,
    return
  }
  func.func @transform_0(%arg0: i32) -> (i32, i32) {
    %c0_i32 = arith.constant 0 : i32
    %c0_i32_0 = arith.constant 0 : i32
    return %c0_i32, %arg0 : i32, i32
  }
  func.func @transform_1(%arg0: i32) -> i32 {
    %c0_i32 = arith.constant 0 : i32
    %c0_i32_0 = arith.constant 0 : i32
    return %c0_i32 : i32
  }
  func.func @transform_2(%arg0: i32) -> (i32, i32) {
    %c0_i32 = arith.constant 0 : i32
    %c0_i32_0 = arith.constant 0 : i32
    return %c0_i32, %arg0 : i32, i32
  }
}

</mosaic_0001>

<bundles_post_ra>
// kernel: tpu_custom_call.1
= control target key start
LH: loop header
LB: loop body
LE: loop exit
PB: predicated region body
PF: predicated region fallthrough
CT: control target
= control target key end

     0   :  { %7 = vsyncpa [#allocation3], 0  ;;  %s282_s0 = inlined_call_operand.hbm [shape: f32[2,128], index: 0, kind: input, shape index: {}]   ;;  %s283_s1 = inlined_call_operand.vmem [shape: f32[15], index: 1, kind: input, shape index: {}]   ;;  %s284_s2 = inlined_call_operand.hbm [shape: f32[1,128], index: 2, kind: output, shape index: {}]  }
   0x1   :  { %8 = vsyncpa [#allocation5], 0 }
   0x2   :  { %9 = vsyncpa [#allocation4], 0  ;;  %s26_s11 = sshll.u32 %s283_s1, 4  ;;  %s216_s12 = smov [#allocation2]   ;;  %s27_s11 = int_to_ptr.vmem [resolvable:$true] %s26_s11 }
   0x3   :  { %s16_s13 = sshll.u32 %s216_s12, 4  ;;  %s154_s16 = scalar_lea.hbm %s282_s0, 32  ;;  %s17_s13 = int_to_ptr.vmem [resolvable:$true] %s16_s13 }
   0x4   :  { %p155_p0 = scmp.ne.s32.totalorder %s282_s0, %s154_s16  ;;  %p158_p1 = scmp.lt.u32.totalorder %s154_s16, %s282_s0 }
   0x6   :  { %p160_p2 = pnand %p158_p1, %p155_p0 }
   0x8   :  { %163 = shalt.err (!%p160_p2)
}
   0x9   :  { %s164_s21 = scalar_lea.vmem %s17_s13, 32  ;;  %p169_p4 = scmp.lt.s32.totalorder %s17_s13, %s17_s13 }
   0xa   :  { %p165_p3 = scmp.ne.s32.totalorder %s17_s13, %s164_s21  ;;  %p170_p5 = scmp.lt.s32.totalorder %s164_s21, %s164_s21 }
   0xc   :  { %p171_p6 = por %p170_p5, %p169_p4 }
   0xe   :  { %p172_p7 = pnand %p171_p6, %p165_p3 }
  0x10   :  { %175 = shalt.err (!%p172_p7)
}
  0x11   :  { %19 = dma.hbm_to_vmem [thread:$0]  %s282_s0, 32, %s17_s13, [#allocation3]  }
  0x12   :  { %s176_s23 = scalar_lea.vmem %s27_s11, 16  ;;  %p181_p9 = scmp.lt.s32.totalorder %s27_s11, %s27_s11 }
  0x13   :  { %p177_p8 = scmp.ne.s32.totalorder %s27_s11, %s176_s23  ;;  %p182_p10 = scmp.lt.s32.totalorder %s176_s23, %s176_s23 }
  0x15   :  { %p183_p11 = por %p182_p10, %p181_p9 }
  0x17   :  { %p184_p12 = pnand %p183_p11, %p177_p8 }
  0x19   :  { %187 = shalt.err (!%p184_p12)
}
  0x1a   :  { %s217_s24 = smov [#allocation6]  }
  0x1b   :  { %29 = dma.vmem_to_smem %s27_s11, 16, %s217_s24, [#allocation5]  }
  0x1c   :  { %210 = dma.done.wait [#allocation3], 32  }
  0x1d   :  { %211 = vsyncadd [#allocation3], 4294967264 }
  0x1e   :  { %212 = dma.done.wait [#allocation5], 16  }
  0x1f   :  { %213 = vsyncadd [#allocation5], 4294967280 }
  0x20   :  { %36 = sfence }
  0x21   :  { %v37_v0 = vld [vmem:[#allocation2] sm:$0x3]  ;;  %s40_s25 = sld [smem:[#allocation6]]  ;;  %s137_s26 = sld [smem:[#allocation6 + $0x1]] }
  0x22   :  { %s138_s27 = sld [smem:[#allocation6 + $0x2]]  ;;  %s139_s28 = sld [smem:[#allocation6 + $0x3]]  ;;  %v38_v1 = vmul.f32 %v37_v0, %v37_v0 }
  0x23   :  { %s140_s0 = sld [smem:[#allocation6 + $0x4]]  ;;  %s249_s29 = sld [smem:[#allocation6 + $0x5]] }
  0x24   :  { %s142_s30 = sld [smem:[#allocation6 + $0x6]]  ;;  %s143_s3 = sld [smem:[#allocation6 + $0x7]]  ;;  %v39_v2 = vmul.f32 %v38_v1, %v37_v0 }
  0x25   :  { %s144_s4 = sld [smem:[#allocation6 + $0x8]]  ;;  %s251_s5 = sld [smem:[#allocation6 + $0x9]] }
  0x26   :  { %s253_s6 = sld [smem:[#allocation6 + $0xa]]  ;;  %s255_s7 = sld [smem:[#allocation6 + $0xb]] }
  0x27   :  { %v41_v3 = vstv %s40_s25  ;;  %v44_v4 = vstv %s137_s26  ;;  %s257_s8 = sld [smem:[#allocation6 + $0xc]]  ;;  %s259_s9 = sld [smem:[#allocation6 + $0xd]] }
  0x28   :  { %v42_v5 = vmul.f32 %v41_v3, %v37_v0  ;;  %v45_v6 = vmul.f32 %v44_v4, %v38_v1  ;;  %v48_v7 = vstv %s138_s27  ;;  %v52_v8 = vstv %s139_s28  ;;  %s261_s10 = sld [smem:[#allocation6 + $0xe]]  ;;  %s218_s11 = smov [#allocation7]  }
  0x29   :  { %v49_v9 = vmul.f32 %v48_v7, %v39_v2  ;;  %v53_v10 = vmul.f32 %v52_v8, %v37_v0  ;;  %v59_v11 = vstv %s140_s0  ;;  %v66_v14 = vstv %s249_s29  ;;  %s127_s12 = sshll.u32 %s218_s11, 4  ;;  %s128_s12 = int_to_ptr.vmem [resolvable:$true] %s127_s12 }
  0x2a   :  { %v46_v12 = vadd.f32 %v45_v6, %v42_v5  ;;  %v73_v13 = vstv %s142_s30  ;;  %v76_v16 = vstv %s143_s3  ;;  %v60_v20 = vmul.f32 %v59_v11, %v38_v1  ;;  %s188_s13 = scalar_lea.vmem %s128_s12, 16  ;;  %s192_s14 = scalar_lea.vmem %s128_s12, 32 }
  0x2b   :  { %v74_v15 = vmul.f32 %v73_v13, %v37_v0  ;;  %v80_v17 = vstv %s144_s4  ;;  %v55_v19 = vrot.slane %v53_v10, 1  ;;  %v77_v21 = vmul.f32 %v76_v16, %v38_v1  ;;  %p189_p13 = scmp.ne.s32.totalorder %s128_s12, %s188_s13  ;;  %p193_p0 = scmp.lt.s32.totalorder %s128_s12, %s128_s12 }
  0x2c   :  { %v50_v18 = vadd.f32 %v49_v9, %v46_v12  ;;  %v81_v22 = vmul.f32 %v80_v17, %v39_v2  ;;  %v88_v23 = vstv %s251_s5  ;;  %v91_v24 = vstv %s253_s6  ;;  %p194_p1 = scmp.lt.s32.totalorder %s192_s14, %s188_s13 }
  0x2d   :  { %v95_v25 = vstv %s255_s7  ;;  %v78_v26 = vadd.f32 %v77_v21, %v74_v15  ;;  %v89_v27 = vmul.f32 %v88_v23, %v37_v0  ;;  %v92_v28 = vmul.f32 %v91_v24, %v38_v1 }
  0x2e   :  { %v96_v29 = vmul.f32 %v95_v25, %v39_v2  ;;  %v104_v30 = vstv %s257_s8  ;;  %v107_v31 = vstv %s259_s9  ;;  %v111_v32 = vstv %s261_s10  ;;  %p195_p2 = por %p194_p1, %p193_p0 }
  0x2f   :  { %v67_v33 = vmul.f32 %v66_v14, %v39_v2  ;;  %v82_v34 = vadd.f32 %v81_v22, %v78_v26  ;;  %v93_v35 = vadd.f32 %v92_v28, %v89_v27  ;;  %v105_v36 = vmul.f32 %v104_v30, %v37_v0 }
  0x30   :  { %v57_v37 = vadd.f32 %v55_v19, %v50_v18  ;;  %v62_v38 = vrot.slane %v60_v20, 1  ;;  %v108_v39 = vmul.f32 %v107_v31, %v38_v1  ;;  %v112_v40 = vmul.f32 %v111_v32, %v39_v2  ;;  %p196_p3 = pnand %p195_p2, %p189_p13 }
  0x31   :  { %v84_v41 = vrot.slane %v82_v34, 1  ;;  %v97_v42 = vadd.f32 %v96_v29, %v93_v35  ;;  %v69_v47 = vrot.slane %v67_v33, 1 }
  0x32   :  { %v109_v43 = vadd.f32 %v108_v39, %v105_v36  ;;  %v64_v46 = vadd.f32 %v62_v38, %v57_v37 }
  0x33   :  { %v86_v44 = vmul.f32 %v84_v41, %v37_v0  ;;  %v99_v45 = vrot.slane %v97_v42, 1 }
  0x34   :  { %v113_v48 = vadd.f32 %v112_v40, %v109_v43  ;;  %v71_v52 = vadd.f32 %v69_v47, %v64_v46 }
  0x35   :  { %v101_v49 = vmul.f32 %v99_v45, %v38_v1 }
  0x36   :  { %v115_v50 = vrot.slane %v113_v48, 1 }
  0x37   :  { %v102_v51 = vadd.f32 %v101_v49, %v86_v44 }
  0x38   :  { %v117_v53 = vmul.f32 %v115_v50, %v39_v2 }
  0x3a   :  { %v118_v54 = vadd.f32 %v117_v53, %v102_v51 }
  0x3c   :  { %v119_v55 = vadd.f32 %v118_v54, %v71_v52 }
  0x3e   :  { %120 = vst [vmem:[#allocation7] sm:$0x1] %v119_v55 }
  0x3f   :  { %199 = shalt.err (!%p196_p3)
}
  0x40   :  { %s200_s17 = scalar_lea.hbm %s284_s2, 16 }
  0x41   :  { %p201_p4 = scmp.ne.s32.totalorder %s284_s2, %s200_s17  ;;  %p204_p5 = scmp.lt.u32.totalorder %s200_s17, %s284_s2 }
  0x43   :  { %p206_p6 = pnand %p204_p5, %p201_p4 }
  0x45   :  { %209 = shalt.err (!%p206_p6)
}
  0x46   :  { %130 = dma.vmem_to_hbm [thread:$0]  %s128_s12, 16, %s284_s2, [#allocation4]  }
  0x47   :  { %214 = dma.done.wait [#allocation4], 16  }
  0x48   :  { %215 = vsyncadd [#allocation4], 4294967280 }
  0x49   :  { %134 = vsyncpa [#allocation3], 1 }
  0x4a   :  { %135 = vsyncpa [#allocation4], 1 }
  0x4b   :  { %136 = vsyncpa [#allocation5], 1 }

</bundles_post_ra>
